<compile_context>
chip_gen: v7x
topology: tpu7x:2x2x1
jax: 0.10.0
libtpu: 0.0.40
codegen_flags: <defaults>
</compile_context>

<pallas_src>
import jax
import jax.numpy as jnp
from jax.experimental import pallas as pl
from jax.experimental.pallas import tpu as pltpu

_MIB = 1024 * 1024


def _round_up(n, m):
    return ((n + m - 1) // m) * m


def _bspec(shape, index_map, nbuf=None):
    """BlockSpec, optionally with an explicit pipeline buffer count.

    Falls back to the default (double-buffered) spec if this JAX build does
    not accept the pipeline_mode kwarg.
    """
    if nbuf is not None:
        try:
            return pl.BlockSpec(shape, index_map, pipeline_mode=pl.Buffered(nbuf))
        except Exception:
            pass
    return pl.BlockSpec(shape, index_map)


def _tpu_defaults():
    """Returns (vmem_budget_bytes, target_tile_b, target_tile_h, two_cores)."""
    kind = ""
    try:
        kind = jax.devices()[0].device_kind.lower()
    except Exception:
        pass

    vmem_cap = None
    try:
        vmem_cap = int(pltpu.get_tpu_info().vmem_capacity_bytes)
    except Exception:
        vmem_cap = None
    if vmem_cap is None or vmem_cap <= 0:
        vmem_cap = 64 * _MIB if "v7" in kind else 128 * _MIB

    if "v6" in kind:
        tb, th, two_cores = 512, 256, False
    elif "v7" in kind:
        tb, th, two_cores = 384, 256, True
    elif "v5" in kind:
        tb, th, two_cores = 256, 256, False
    else:  # unknown: conservative
        tb, th, two_cores = 256, 256, True

    # Leave headroom for compiler-internal scratch / semaphores.
    budget = vmem_cap - max(8 * _MIB, vmem_cap // 8)
    return budget, tb, th, two_cores


# ---------------------------------------------------------------------------
# Kernels
# ---------------------------------------------------------------------------

def sae_kernel_fullh(x_ref, we_ref, be_ref, wd_ref, bd_ref, xhat_ref, h_ref):
    """Both weights resident in VMEM; one batch tile per grid step."""
    x = x_ref[...].astype(we_ref.dtype)                      # cast in-kernel (VPU)
    h = jnp.dot(x, we_ref[...], preferred_element_type=jnp.float32)
    h = jnp.maximum(h + be_ref[...], 0.0)
    h_ref[...] = h.astype(h_ref.dtype)
    xhat = jnp.dot(h.astype(wd_ref.dtype), wd_ref[...],
                   preferred_element_type=jnp.float32)
    xhat_ref[...] = (xhat + bd_ref[...]).astype(xhat_ref.dtype)


def sae_kernel_tiled(x_ref, we_ref, be_ref, wd_ref, bd_ref, xhat_ref, h_ref,
                     acc_ref):
    """One (batch-tile, hidden-tile) step; x_hat accumulated over hidden tiles."""
    j = pl.program_id(1)

    @pl.when(j == 0)
    def _():
        acc_ref[...] = jnp.zeros_like(acc_ref)

    x = x_ref[...].astype(we_ref.dtype)
    # Encoder tile: h_j = relu(x @ We^T[:, j_tile] + be[j_tile])
    h = jnp.dot(x, we_ref[...], preferred_element_type=jnp.float32)
    h = jnp.maximum(h + be_ref[...], 0.0)
    h_ref[...] = h.astype(h_ref.dtype)

    # Decoder partial sum: x_hat += h_j @ Wd^T[j_tile, :]   (f32 accumulator)
    acc_ref[...] += jnp.dot(h.astype(wd_ref.dtype), wd_ref[...],
                            preferred_element_type=jnp.float32)

    @pl.when(j == pl.num_programs(1) - 1)
    def _():
        xhat_ref[...] = (acc_ref[...] + bd_ref[...]).astype(xhat_ref.dtype)


# ---------------------------------------------------------------------------
# Host-side wrapper
# ---------------------------------------------------------------------------

def prepare_params(w_enc, b_enc, w_dec, b_dec, compute_dtype=jnp.bfloat16):
    """One-time conversion from PyTorch (out, in) layout to kernel (in, out) layout.

    Do this once at parameter-load time, NOT per forward call.
    """
    we_t = jnp.asarray(w_enc).T.astype(compute_dtype)    # (D, H)
    wd_t = jnp.asarray(w_dec).T.astype(compute_dtype)    # (H, D)
    be = jnp.asarray(b_enc, jnp.float32)                 # (H,)
    bd = jnp.asarray(b_dec, jnp.float32)                 # (D,)
    return we_t, be, wd_t, bd


def sae_forward(x, we_t, b_enc, wd_t, b_dec, *, tile_b=None, tile_h=None,
                compute_dtype=jnp.bfloat16, xhat_dtype=None,
                h_dtype=jnp.bfloat16):
    """Fused SAE forward.

    x: (B, D); we_t: (D, H) encoder weight (in, out) layout; b_enc: (H,);
    wd_t: (H, D) decoder weight (in, out) layout; b_dec: (D,).
    Returns (x_hat: (B, D) in xhat_dtype (default x.dtype),
             h:     (B, H) in h_dtype   (default bfloat16)).
    """
    B, D = x.shape
    H = we_t.shape[1]
    assert we_t.shape == (D, H) and wd_t.shape == (H, D)
    assert b_enc.shape[-1] == H and b_dec.shape[-1] == D

    xhat_dtype = jnp.dtype(x.dtype) if xhat_dtype is None else jnp.dtype(xhat_dtype)
    h_dtype = jnp.dtype(x.dtype) if h_dtype is None else jnp.dtype(h_dtype)

    budget, tb_default, th_default, two_cores = _tpu_defaults()

    comp_isz = jnp.dtype(compute_dtype).itemsize
    x_isz = jnp.dtype(x.dtype).itemsize
    xh_isz = xhat_dtype.itemsize
    h_isz = h_dtype.itemsize

    # --- hidden tiling: full-H fast path when both weights fit comfortably ---
    weights_bytes = 2 * D * H * comp_isz
    if tile_h is None:
        if weights_bytes <= budget // 4 or H % 128 != 0:
            tile_h = H
        else:
            tile_h = next((t for t in (th_default, 512, 384, 256, 128)
                           if t <= H and H % t == 0), H)
    tile_h = int(tile_h)
    full_h = tile_h >= H
    if full_h:
        tile_h = H
    elif H % tile_h != 0 or tile_h % 128 != 0:
        raise ValueError("tile_h must divide H and be a multiple of 128 "
                         f"(got tile_h={tile_h}, H={H})")

    # --- batch tiling (primary arithmetic-intensity knob) ---
    if tile_b is None:
        tile_b = tb_default
    tile_b = max(16, _round_up(min(int(tile_b), _round_up(B, 16)), 16))
    if two_cores and B >= 256:
        # Keep >= 2 batch tiles so the 'parallel' axis spans both TensorCores.
        tile_b = min(tile_b, _round_up(pl.cdiv(B, 2), 16))

    def _footprint(tb):
        if full_h:
            return (tb * D * x_isz * 2                      # x tile (double-buffered)
                    + 2 * D * H * comp_isz + (H + D) * 4    # resident weights + biases
                    + tb * D * xh_isz * 2                   # x_hat out
                    + tb * H * h_isz * 2)                   # h out
        return (tb * D * x_isz                              # x (j-resident, 1 buffer)
                + 2 * D * tile_h * comp_isz * 2             # We^T / Wd^T tiles (x2 buf)
                + tile_h * 4 * 2 + D * 4                    # biases
                + tb * D * xh_isz * 2                       # x_hat out
                + tb * tile_h * h_isz * 2                   # h out
                + tb * D * 4)                               # f32 accumulator

    while _footprint(tile_b) > budget and tile_b > 16:
        tile_b = max(16, _round_up(tile_b // 2, 16))

    n_b = pl.cdiv(B, tile_b)

    if full_h:
        grid = (n_b,)
        in_specs = [
            _bspec((tile_b, D), lambda i: (i, 0)),            # x batch tile
            _bspec((D, H), lambda i: (0, 0), nbuf=1),         # We^T (resident)
            _bspec((1, H), lambda i: (0, 0), nbuf=1),         # b_enc (resident)
            _bspec((H, D), lambda i: (0, 0), nbuf=1),         # Wd^T (resident)
            _bspec((1, D), lambda i: (0, 0), nbuf=1),         # b_dec (resident)
        ]
        out_specs = [
            pl.BlockSpec((tile_b, D), lambda i: (i, 0)),      # x_hat
            pl.BlockSpec((tile_b, H), lambda i: (i, 0)),      # h
        ]
        scratch_shapes = ()
        dim_sem = ("parallel",)
        kernel = sae_kernel_fullh
        weight_reads = 1
    else:
        grid = (n_b, H // tile_h)
        in_specs = [
            _bspec((tile_b, D), lambda i, j: (i, 0), nbuf=1),      # x (j-resident)
            _bspec((D, tile_h), lambda i, j: (0, j)),              # We^T hidden tile
            _bspec((1, tile_h), lambda i, j: (0, j)),              # b_enc hidden tile
            _bspec((tile_h, D), lambda i, j: (j, 0)),              # Wd^T hidden tile
            _bspec((1, D), lambda i, j: (0, 0), nbuf=1),           # b_dec (resident)
        ]
        out_specs = [
            pl.BlockSpec((tile_b, D), lambda i, j: (i, 0)),        # x_hat (acc over j)
            pl.BlockSpec((tile_b, tile_h), lambda i, j: (i, j)),   # h tile
        ]
        scratch_shapes = (pltpu.VMEM((tile_b, D), jnp.float32),)   # f32 accumulator
        dim_sem = ("parallel", "arbitrary")
        kernel = sae_kernel_tiled
        weight_reads = n_b

    # Scheduling hint for XLA around the custom call (weights re-streamed once
    # per batch tile in the tiled path).
    cost = pl.CostEstimate(
        flops=4 * B * D * H,
        transcendentals=0,
        bytes_accessed=int(B * D * x_isz
                           + weight_reads * (2 * D * H * comp_isz + (H + D) * 4)
                           + B * D * xh_isz + B * H * h_isz),
    )

    we_c = we_t.astype(compute_dtype)        # no-op if prepare_params already cast
    wd_c = wd_t.astype(compute_dtype)
    be = jnp.asarray(b_enc, jnp.float32).reshape(1, H)
    bd = jnp.asarray(b_dec, jnp.float32).reshape(1, D)

    x_hat, h = pl.pallas_call(
        kernel,
        out_shape=(
            jax.ShapeDtypeStruct((B, D), xhat_dtype),
            jax.ShapeDtypeStruct((B, H), h_dtype),
        ),
        grid_spec=pltpu.PrefetchScalarGridSpec(
            num_scalar_prefetch=0,
            grid=grid,
            in_specs=in_specs,
            out_specs=out_specs,
            scratch_shapes=scratch_shapes,
        ),
        compiler_params=pltpu.CompilerParams(
            dimension_semantics=dim_sem,
            vmem_limit_bytes=int(budget),
        ),
        cost_estimate=cost,
    )(x, we_c, be, wd_c, bd)

    return x_hat, h


# ---------------------------------------------------------------------------
# References and tests
# ---------------------------------------------------------------------------

def sae_forward_ref(x, w_enc, b_enc, w_dec, b_dec):
    """Pure-JAX f32 reference matching the PyTorch module exactly."""
    h = jax.nn.relu(x @ w_enc.T + b_enc)
    x_hat = h @ w_dec.T + b_dec
    return x_hat, h


def sae_forward_ref_matched(x, we_t, b_enc, wd_t, b_dec, *,
                            compute_dtype=jnp.bfloat16,
                            xhat_dtype=None, h_dtype=jnp.bfloat16):
    """Reference using the kernel's precision plan (bf16 MXU in, f32 accumulate)."""
    xhat_dtype = x.dtype if xhat_dtype is None else xhat_dtype
    h_f32 = jnp.dot(x.astype(compute_dtype), we_t.astype(compute_dtype),
                    preferred_element_type=jnp.float32)
    h_f32 = jnp.maximum(h_f32 + b_enc.reshape(1, -1).astype(jnp.float32), 0.0)
    xh = jnp.dot(h_f32.astype(compute_dtype), wd_t.astype(compute_dtype),
                 preferred_element_type=jnp.float32)
    xh = xh + b_dec.reshape(1, -1).astype(jnp.float32)
    return xh.astype(xhat_dtype), h_f32.astype(h_dtype)


def _run_case(B, D, H, **kw):
    key = jax.random.PRNGKey(0)
    kx, kwe, kbe, kwd, kbd = jax.random.split(key, 5)

    x = jax.random.normal(kx, (B, D), dtype=jnp.float32)

    # nn.Linear-style uniform init bounds.
    bound_enc = 1.0 / (D ** 0.5)
    bound_dec = 1.0 / (H ** 0.5)
    w_enc = jax.random.uniform(kwe, (H, D), jnp.float32, -bound_enc, bound_enc)
    b_enc = jax.random.uniform(kbe, (H,), jnp.float32, -bound_enc, bound_enc)
    w_dec = jax.random.uniform(kwd, (D, H), jnp.float32, -bound_dec, bound_dec)
    b_dec = jax.random.uniform(kbd, (D,), jnp.float32, -bound_dec, bound_dec)

    # One-time layout/dtype conversion, outside the per-call path.
    we_t, be, wd_t, bd = prepare_params(w_enc, b_enc, w_dec, b_dec)

    fwd = jax.jit(sae_forward,
                  static_argnames=("tile_b", "tile_h", "compute_dtype",
                                   "xhat_dtype", "h_dtype"))
    x_hat, h = fwd(x, we_t, be, wd_t, bd, **kw)
    jax.block_until_ready((x_hat, h))
    assert x_hat.shape == (B, D) and h.shape == (B, H)

    # Tight check vs a reference with the same precision plan.
    xh_m, h_m = sae_forward_ref_matched(x, we_t, be, wd_t, bd,
                                        xhat_dtype=x_hat.dtype, h_dtype=h.dtype)
    assert jnp.allclose(x_hat.astype(jnp.float32), xh_m.astype(jnp.float32),
                        atol=5e-3, rtol=5e-3), "x_hat mismatch (matched ref)"
    assert jnp.allclose(h.astype(jnp.float32), h_m.astype(jnp.float32),
                        atol=5e-3, rtol=5e-3), "h mismatch (matched ref)"

    # Looser check vs the full-f32 PyTorch-equivalent reference (bf16 MXU inputs).
    xh_r, h_r = sae_forward_ref(x, w_enc, b_enc, w_dec, b_dec)
    assert jnp.allclose(x_hat.astype(jnp.float32), xh_r, atol=5e-2, rtol=5e-2), \
        "x_hat mismatch (f32 ref)"
    assert jnp.allclose(h.astype(jnp.float32), h_r, atol=5e-2, rtol=5e-2), \
        "h mismatch (f32 ref)"


if __name__ == "__main__":
    # Case 1: module's default hidden_dim=128 — small weights take the full-H
    # fast path (single grid axis over batch, weights resident in VMEM).
    _run_case(B=64, D=256, H=128)

    # Case 2: force the tiled-hidden path (tile_h < H) with a non-divisible
    # batch (exercises pl.cdiv grid + masked partial last batch tile and the
    # f32 accumulator with pl.when init/finalize).
    _run_case(B=200, D=256, H=256, tile_b=128, tile_h=128)

    # Case 3: auto tile selection with >= 2 batch tiles (megacore-splittable
    # 'parallel' batch axis on v7x); full-H fast path for these small weights.
    _run_case(B=256, D=256, H=256)

    # TODO(synk): the module's loss() (MSE + L1 sparsity penalty) is training-side
    # and is left to plain JAX; only forward() is implemented as a kernel.
    print("KERNEL_OK")
</pallas_src>

<mosaic_0001>
module attributes {stable_mosaic.version = 11 : i64} {
  func.func @sae_kernel_fullh(%arg0: i32, %arg1: memref<64x256xf32, #tpu.memory_space<vmem>>, %arg2: memref<256x128xbf16, #tpu.memory_space<vmem>>, %arg3: memref<1x128xf32, #tpu.memory_space<vmem>>, %arg4: memref<128x256xbf16, #tpu.memory_space<vmem>>, %arg5: memref<1x256xf32, #tpu.memory_space<vmem>>, %arg6: memref<64x256xf32, #tpu.memory_space<vmem>>, %arg7: memref<64x128xbf16, #tpu.memory_space<vmem>>) attributes {dimension_semantics = [#tpu.dimension_semantics<parallel>], iteration_bounds = array<i64: 1>, scalar_prefetch = 0 : i64, scratch_operands = 0 : i64, tpu.core_type = #tpu.core_type<tc>, window_params = [{transform_indices = @transform_0, window_bounds = array<i64: 64, 256>}, {pipeline_mode = #tpu.pipeline_mode<synchronous>, transform_indices = @transform_1, window_bounds = array<i64: 256, 128>}, {pipeline_mode = #tpu.pipeline_mode<synchronous>, transform_indices = @transform_2, window_bounds = array<i64: 1, 128>}, {pipeline_mode = #tpu.pipeline_mode<synchronous>, transform_indices = @transform_3, window_bounds = array<i64: 128, 256>}, {pipeline_mode = #tpu.pipeline_mode<synchronous>, transform_indices = @transform_4, window_bounds = array<i64: 1, 256>}, {transform_indices = @transform_5, window_bounds = array<i64: 64, 256>}, {transform_indices = @transform_6, window_bounds = array<i64: 64, 128>}]} {
    %c0 = arith.constant 0 : index
    %c0_0 = arith.constant 0 : index
    %0 = vector.load %arg1[%c0, %c0_0] : memref<64x256xf32, #tpu.memory_space<vmem>>, vector<64x256xf32>
    %1 = arith.truncf %0 : vector<64x256xf32> to vector<64x256xbf16>
    %c0_1 = arith.constant 0 : index
    %c0_2 = arith.constant 0 : index
    %2 = vector.load %arg2[%c0_1, %c0_2] : memref<256x128xbf16, #tpu.memory_space<vmem>>, vector<256x128xbf16>
    %cst = arith.constant dense<0.000000e+00> : vector<64x128xf32>
    %3 = tpu.matmul %1, %2, %cst {dimension_numbers = #tpu.dot_dimension_numbers<[1], [0], [0], [1], [0, 0, 1, 1], [], []>} : vector<64x256xbf16>, vector<256x128xbf16>, vector<64x128xf32> -> vector<64x128xf32>
    %c0_3 = arith.constant 0 : index
    %c0_4 = arith.constant 0 : index
    %4 = vector.load %arg3[%c0_3, %c0_4] : memref<1x128xf32, #tpu.memory_space<vmem>>, vector<1x128xf32>
    %5 = vector.broadcast %4 : vector<1x128xf32> to vector<64x128xf32>
    %6 = arith.addf %3, %5 : vector<64x128xf32>
    %cst_5 = arith.constant 0.000000e+00 : f32
    %7 = vector.broadcast %cst_5 : f32 to vector<64x128xf32>
    %8 = arith.maximumf %6, %7 : vector<64x128xf32>
    %9 = arith.truncf %8 : vector<64x128xf32> to vector<64x128xbf16>
    %c0_6 = arith.constant 0 : index
    %c0_7 = arith.constant 0 : index
    %10 = vector.load %arg7[%c0_6, %c0_7] : memref<64x128xbf16, #tpu.memory_space<vmem>>, vector<64x128xbf16>
    tpu.vector_store %arg7[%c0_6, %c0_7], %9 {strides = array<i32>} : memref<64x128xbf16, #tpu.memory_space<vmem>>, vector<64x128xbf16>,
    %11 = arith.truncf %8 : vector<64x128xf32> to vector<64x128xbf16>
    %c0_8 = arith.constant 0 : index
    %c0_9 = arith.constant 0 : index
    %12 = vector.load %arg4[%c0_8, %c0_9] : memref<128x256xbf16, #tpu.memory_space<vmem>>, vector<128x256xbf16>
    %cst_10 = arith.constant dense<0.000000e+00> : vector<64x256xf32>
    %13 = tpu.matmul %11, %12, %cst_10 {dimension_numbers = #tpu.dot_dimension_numbers<[1], [0], [0], [1], [0, 0, 1, 1], [], []>} : vector<64x128xbf16>, vector<128x256xbf16>, vector<64x256xf32> -> vector<64x256xf32>
    %c0_11 = arith.constant 0 : index
    %c0_12 = arith.constant 0 : index
    %14 = vector.load %arg5[%c0_11, %c0_12] : memref<1x256xf32, #tpu.memory_space<vmem>>, vector<1x256xf32>
    %15 = vector.broadcast %14 : vector<1x256xf32> to vector<64x256xf32>
    %16 = arith.addf %13, %15 : vector<64x256xf32>
    %c0_13 = arith.constant 0 : index
    %c0_14 = arith.constant 0 : index
    %17 = vector.load %arg6[%c0_13, %c0_14] : memref<64x256xf32, #tpu.memory_space<vmem>>, vector<64x256xf32>
    tpu.vector_store %arg6[%c0_13, %c0_14], %16 {strides = array<i32>} : memref<64x256xf32, #tpu.memory_space<vmem>>, vector<64x256xf32>,
    return
  }
  func.func @transform_0(%arg0: i32) -> (i32, i32) {
    %c0_i32 = arith.constant 0 : i32
    %c0_i32_0 = arith.constant 0 : i32
    return %arg0, %c0_i32 : i32, i32
  }
  func.func @transform_1(%arg0: i32) -> (i32, i32) {
    %c0_i32 = arith.constant 0 : i32
    %c0_i32_0 = arith.constant 0 : i32
    %c0_i32_1 = arith.constant 0 : i32
    return %c0_i32, %c0_i32_0 : i32, i32
  }
  func.func @transform_2(%arg0: i32) -> (i32, i32) {
    %c0_i32 = arith.constant 0 : i32
    %c0_i32_0 = arith.constant 0 : i32
    %c0_i32_1 = arith.constant 0 : i32
    return %c0_i32, %c0_i32_0 : i32, i32
  }
  func.func @transform_3(%arg0: i32) -> (i32, i32) {
    %c0_i32 = arith.constant 0 : i32
    %c0_i32_0 = arith.constant 0 : i32
    %c0_i32_1 = arith.constant 0 : i32
    return %c0_i32, %c0_i32_0 : i32, i32
  }
  func.func @transform_4(%arg0: i32) -> (i32, i32) {
    %c0_i32 = arith.constant 0 : i32
    %c0_i32_0 = arith.constant 0 : i32
    %c0_i32_1 = arith.constant 0 : i32
    return %c0_i32, %c0_i32_0 : i32, i32
  }
  func.func @transform_5(%arg0: i32) -> (i32, i32) {
    %c0_i32 = arith.constant 0 : i32
    %c0_i32_0 = arith.constant 0 : i32
    return %arg0, %c0_i32 : i32, i32
  }
  func.func @transform_6(%arg0: i32) -> (i32, i32) {
    %c0_i32 = arith.constant 0 : i32
    %c0_i32_0 = arith.constant 0 : i32
    return %arg0, %c0_i32 : i32, i32
  }
}

</mosaic_0001>

<bundles_post_ra>
// kernel: sae_forward.1
= control target key start
LH: loop header
LB: loop body
LE: loop exit
PB: predicated region body
PF: predicated region fallthrough
CT: control target
= control target key end

     0   :  { %12 = vsyncpa [#allocation3], 0  ;;  %s1068_s0 = inlined_call_operand.hbm [shape: f32[64,256], index: 0, kind: input, shape index: {}]   ;;  %s1069_s1 = inlined_call_operand.hbm [shape: bf16[256,128], index: 1, kind: input, shape index: {}]   ;;  %s1070_s2 = inlined_call_operand.hbm [shape: f32[1,128], index: 2, kind: input, shape index: {}]   ;;  %s1071_s3 = inlined_call_operand.hbm [shape: bf16[128,256], index: 3, kind: input, shape index: {}]   ;;  %s1072_s4 = inlined_call_operand.hbm [shape: f32[1,256], index: 4, kind: input, shape index: {}]   ;;  %s1073_s5 = inlined_call_operand.hbm [shape: f32[64,256], index: 5, kind: output, shape index: {0}]   ;;  %s1074_s6 = inlined_call_operand.hbm [shape: bf16[64,128], index: 6, kind: output, shape index: {1}]  }
   0x1   :  { %13 = vsyncpa [#allocation6], 0 }
   0x2   :  { %14 = vsyncpa [#allocation9], 0 }
   0x3   :  { %15 = vsyncpa [#allocation4], 0 }
   0x4   :  { %16 = vsyncpa [#allocation13], 0  ;;  %s923_s21 = smov [#allocation5]   ;;  %s759_s25 = scalar_lea.hbm %s1069_s1, 2048 }
   0x5   :  { %s34_s22 = sshll.u32 %s923_s21, 4  ;;  %p760_p0 = scmp.ne.s32.totalorder %s1069_s1, %s759_s25  ;;  %s35_s22 = int_to_ptr.vmem [resolvable:$true] %s34_s22 }
   0x6   :  { %p763_p1 = scmp.lt.u32.totalorder %s759_s25, %s1069_s1 }
   0x8   :  { %p765_p2 = pnand %p763_p1, %p760_p0 }
   0xa   :  { %768 = shalt.err (!%p765_p2)
}
   0xb   :  { %s769_s30 = scalar_lea.vmem %s35_s22, 2048  ;;  %p774_p4 = scmp.lt.s32.totalorder %s35_s22, %s35_s22 }
   0xc   :  { %p770_p3 = scmp.ne.s32.totalorder %s35_s22, %s769_s30  ;;  %p775_p5 = scmp.lt.s32.totalorder %s769_s30, %s769_s30 }
   0xe   :  { %p776_p6 = por %p775_p5, %p774_p4 }
  0x10   :  { %p777_p7 = pnand %p776_p6, %p770_p3 }
  0x12   :  { %780 = shalt.err (!%p777_p7)
}
  0x13   :  { %s924_s7 = smov 64   ;;  %s925_s8 = smov 4  }
  0x14   :  { %40 = dma.hbm_to_vmem [thread:$0]  %s1069_s1, 2048, %s35_s22, [#allocation6], %s924_s7, %s924_s7, %s925_s8  }
  0x15   :  { %s926_s11 = smov [#allocation8]   ;;  %s781_s15 = scalar_lea.hbm %s1071_s3, 2048 }
  0x16   :  { %s56_s12 = sshll.u32 %s926_s11, 4  ;;  %p782_p8 = scmp.ne.s32.totalorder %s1071_s3, %s781_s15  ;;  %s57_s12 = int_to_ptr.vmem [resolvable:$true] %s56_s12 }
  0x17   :  { %p785_p9 = scmp.lt.u32.totalorder %s781_s15, %s1071_s3 }
  0x19   :  { %p787_p10 = pnand %p785_p9, %p782_p8 }
  0x1b   :  { %790 = shalt.err (!%p787_p10)
}
  0x1c   :  { %s791_s20 = scalar_lea.vmem %s57_s12, 2048  ;;  %p796_p12 = scmp.lt.s32.totalorder %s57_s12, %s57_s12 }
  0x1d   :  { %p792_p11 = scmp.ne.s32.totalorder %s57_s12, %s791_s20  ;;  %p797_p13 = scmp.lt.s32.totalorder %s791_s20, %s791_s20 }
  0x1f   :  { %p798_p0 = por %p797_p13, %p796_p12 }
  0x21   :  { %p799_p1 = pnand %p798_p0, %p792_p11 }
  0x23   :  { %802 = shalt.err (!%p799_p1)
}
  0x24   :  { %s927_s1 = smov 128   ;;  %s928_s21 = smov 8  }
  0x25   :  { %62 = dma.hbm_to_vmem [thread:$0]  %s1071_s3, 2048, %s57_s12, [#allocation9], %s927_s1, %s927_s1, %s928_s21  }
  0x26   :  { %s929_s24 = smov [#allocation2]   ;;  %s803_s28 = scalar_lea.hbm %s1068_s0, 2048 }
  0x27   :  { %s22_s25 = sshll.u32 %s929_s24, 4  ;;  %p804_p2 = scmp.ne.s32.totalorder %s1068_s0, %s803_s28  ;;  %s23_s25 = int_to_ptr.vmem [resolvable:$true] %s22_s25 }
  0x28   :  { %p807_p3 = scmp.lt.u32.totalorder %s803_s28, %s1068_s0 }
  0x2a   :  { %p809_p4 = pnand %p807_p3, %p804_p2 }
  0x2c   :  { %812 = shalt.err (!%p809_p4)
}
  0x2d   :  { %s813_s11 = scalar_lea.vmem %s23_s25, 2048  ;;  %p818_p6 = scmp.lt.s32.totalorder %s23_s25, %s23_s25 }
  0x2e   :  { %p814_p5 = scmp.ne.s32.totalorder %s23_s25, %s813_s11  ;;  %p819_p7 = scmp.lt.s32.totalorder %s813_s11, %s813_s11 }
  0x30   :  { %p820_p8 = por %p819_p7, %p818_p6 }
  0x32   :  { %p821_p9 = pnand %p820_p8, %p814_p5 }
  0x34   :  { %824 = shalt.err (!%p821_p9)
}
  0x35   :  { %s930_s3 = smov 256   ;;  %s931_s12 = smov 16  }
  0x36   :  { %28 = dma.hbm_to_vmem [thread:$0]  %s1068_s0, 2048, %s23_s25, [#allocation3], %s930_s3, %s930_s3, %s931_s12  }
  0x37   :  { %s932_s15 = smov [#allocation7]   ;;  %s933_s17 = smov [#allocation10]  }
  0x38   :  { %s47_s16 = sshll.u32 %s932_s15, 4  ;;  %s69_s18 = sshll.u32 %s933_s17, 4  ;;  %s48_s16 = int_to_ptr.vmem [resolvable:$true] %s47_s16  ;;  %s70_s18 = int_to_ptr.vmem [resolvable:$true] %s69_s18 }
  0x39   :  { %s825_s1 = scalar_lea.hbm %s1070_s2, 16 }
  0x3a   :  { %p826_p10 = scmp.ne.s32.totalorder %s1070_s2, %s825_s1  ;;  %p829_p11 = scmp.lt.u32.totalorder %s825_s1, %s1070_s2 }
  0x3c   :  { %p831_p12 = pnand %p829_p11, %p826_p10 }
  0x3e   :  { %834 = shalt.err (!%p831_p12)
}
  0x3f   :  { %s835_s0 = scalar_lea.vmem %s48_s16, 16  ;;  %s839_s25 = scalar_lea.vmem %s48_s16, 32 }
  0x40   :  { %p836_p13 = scmp.ne.s32.totalorder %s48_s16, %s835_s0  ;;  %p840_p0 = scmp.lt.s32.totalorder %s48_s16, %s48_s16 }
  0x41   :  { %p841_p1 = scmp.lt.s32.totalorder %s839_s25, %s835_s0 }
  0x43   :  { %p842_p2 = por %p841_p1, %p840_p0 }
  0x45   :  { %p843_p3 = pnand %p842_p2, %p836_p13 }
  0x47   :  { %846 = shalt.err (!%p843_p3)
}
  0x48   :  { %50 = dma.hbm_to_vmem [thread:$0]  %s1070_s2, 16, %s48_s16, [#allocation6]  }
  0x49   :  { %s847_s30 = scalar_lea.hbm %s1072_s4, 32 }
  0x4a   :  { %p848_p4 = scmp.ne.s32.totalorder %s1072_s4, %s847_s30  ;;  %p851_p5 = scmp.lt.u32.totalorder %s847_s30, %s1072_s4 }
  0x4c   :  { %p853_p6 = pnand %p851_p5, %p848_p4 }
  0x4e   :  { %856 = shalt.err (!%p853_p6)
}
  0x4f   :  { %s857_s14 = scalar_lea.vmem %s70_s18, 32  ;;  %p862_p8 = scmp.lt.s32.totalorder %s70_s18, %s70_s18 }
  0x50   :  { %p858_p7 = scmp.ne.s32.totalorder %s70_s18, %s857_s14  ;;  %p863_p9 = scmp.lt.s32.totalorder %s857_s14, %s857_s14 }
  0x52   :  { %p864_p10 = por %p863_p9, %p862_p8 }
  0x54   :  { %p865_p11 = pnand %p864_p10, %p858_p7 }
  0x56   :  { %868 = shalt.err (!%p865_p11)
}
  0x57   :  { %72 = dma.hbm_to_vmem [thread:$0]  %s1072_s4, 32, %s70_s18, [#allocation9]  }
  0x58   :  { %913 = dma.done.wait [#allocation3], 2048  }
  0x59   :  { %914 = vsyncadd [#allocation3], 4294965248 }
  0x5a   :  { %915 = dma.done.wait [#allocation6], 2064  }
  0x5b   :  { %916 = vsyncadd [#allocation6], 4294965232 }
  0x5c   :  { %917 = dma.done.wait [#allocation9], 2080  }
  0x5d   :  { %918 = vsyncadd [#allocation9], 4294965216  ;;  %v719_v0 = vld [vmem:[#allocation5 + $0x40] sm:$0xff]   ;;  %v721_v2 = vld [vmem:[#allocation5 + $0x48] sm:$0xff]   ;;  %v934_v56 = vmov 0   ;;  %s935_s4 = smov [#allocation12]  }
  0x5e   :  { %v720_v1 = vld [vmem:[#allocation5] sm:$0xff]   ;;  %665 = vmatprep.subr.bf16.mxu0 %v719_v0  ;;  %v722_v3 = vld [vmem:[#allocation5 + $0x8] sm:$0xff]   ;;  %v723_v4 = vld [vmem:[#allocation5 + $0x50] sm:$0xff]   ;;  %501 = vmatprep.mubr.bf16.mxu1 %v934_v56  ;;  %s575_s16 = sshll.u32 %s935_s4, 4  ;;  %s576_s16 = int_to_ptr.vmem [resolvable:$true] %s575_s16 }
  0x5f   :  { %666 = vmatpush3.bf16.msra.mxu0 %v720_v1  ;;  %v724_v5 = vld [vmem:[#allocation5 + $0x10] sm:$0xff]   ;;  %v725_v6 = vld [vmem:[#allocation5 + $0x58] sm:$0xff]   ;;  %v727_v8 = vld [vmem:[#allocation5 + $0x60] sm:$0xff]   ;;  %s869_s17 = scalar_lea.vmem %s576_s16, 512  ;;  %p874_p13 = scmp.lt.s32.totalorder %s576_s16, %s576_s16 }
  0x60   :  { %667 = vmatprep.subr.bf16.mxu0 %v721_v2  ;;  %v726_v7 = vld [vmem:[#allocation5 + $0x18] sm:$0xff]   ;;  %v728_v9 = vld [vmem:[#allocation5 + $0x20] sm:$0xff]   ;;  %v729_v10 = vld [vmem:[#allocation5 + $0x68] sm:$0xff]   ;;  %p870_p12 = scmp.ne.s32.totalorder %s576_s16, %s869_s17  ;;  %p875_p0 = scmp.lt.s32.totalorder %s869_s17, %s869_s17 }
  0x61   :  { %v90_v11 = vld [vmem:[#allocation2 + $0x8] sm:$0xff]  ;;  %v92_v12 = vld [vmem:[#allocation2 + $0x18] sm:$0xff]  ;;  %v731_v15 = vld [vmem:[#allocation5 + $0x70] sm:$0xff]  }
  0x62   :  { %v106_v13 = vpack.c.bf16 %v92_v12, %v90_v11  ;;  %v730_v14 = vld [vmem:[#allocation5 + $0x28] sm:$0xff]   ;;  %v732_v18 = vld [vmem:[#allocation5 + $0x30] sm:$0xff]   ;;  %v733_v20 = vld [vmem:[#allocation5 + $0x78] sm:$0xff]   ;;  %p876_p1 = por %p875_p0, %p874_p13 }
  0x63   :  { %668 = vmatpush3.bf16.msra.mxu0 %v722_v3  ;;  %v735_v16 = vld [vmem:[#allocation8 + $0x4] ss:$8 sps:$4 sm:$0xff]   ;;  %v737_v17 = vld [vmem:[#allocation8] ss:$8 sps:$4 sm:$0xff]   ;;  %v738_v19 = vld [vmem:[#allocation8 + $0x14] ss:$8 sps:$4 sm:$0xff]  }
  0x64   :  { %669 = vmatprep.subr.bf16.mxu0 %v723_v4  ;;  %280 = vmatprep.mubr.bf16.mxu0 %v106_v13  ;;  %v734_v21 = vld [vmem:[#allocation5 + $0x38] sm:$0xff]   ;;  %v89_v22 = vld [vmem:[#allocation2] sm:$0xff]  ;;  %v91_v23 = vld [vmem:[#allocation2 + $0x10] sm:$0xff]  ;;  %p877_p2 = pnand %p876_p1, %p870_p12 }
  0x65   :  { %469 = vmatprep.subr.bf16.mxu1 %v735_v16  ;;  %v740_v24 = vld [vmem:[#allocation8 + $0x10] ss:$8 sps:$4 sm:$0xff]   ;;  %v94_v25 = vld [vmem:[#allocation2 + $0x28] sm:$0xff]  ;;  %v105_v29 = vpack.c.bf16 %v91_v23, %v89_v22  ;;  %v744_v30 = vld [vmem:[#allocation8 + $0x34] ss:$8 sps:$4 sm:$0xff]  }
  0x66   :  { %470 = vmatpush1.bf16.msra.mxu1 %v737_v17  ;;  %v741_v26 = vld [vmem:[#allocation8 + $0x24] ss:$8 sps:$4 sm:$0xff]   ;;  %v96_v27 = vld [vmem:[#allocation2 + $0x38] sm:$0xff]  ;;  %v743_v28 = vld [vmem:[#allocation8 + $0x20] ss:$8 sps:$4 sm:$0xff]  }
  0x67   :  { %670 = vmatpush3.bf16.msra.mxu0 %v724_v5  ;;  %471 = vmatprep.subr.bf16.mxu1 %v738_v19  ;;  %v108_v31 = vpack.c.bf16 %v96_v27, %v94_v25  ;;  %v746_v32 = vld [vmem:[#allocation8 + $0x30] ss:$8 sps:$4 sm:$0xff]   ;;  %v747_v33 = vld [vmem:[#allocation8 + $0x44] ss:$8 sps:$4 sm:$0xff]   ;;  %v749_v38 = vld [vmem:[#allocation8 + $0x40] ss:$8 sps:$4 sm:$0xff]  }
  0x68   :  { %671 = vmatprep.subr.bf16.mxu0 %v725_v6  ;;  %v93_v34 = vld [vmem:[#allocation2 + $0x20] sm:$0xff]  ;;  %v95_v35 = vld [vmem:[#allocation2 + $0x30] sm:$0xff]  ;;  %v98_v36 = vld [vmem:[#allocation2 + $0x48] sm:$0xff] }
  0x69   :  { %v100_v37 = vld [vmem:[#allocation2 + $0x58] sm:$0xff]  ;;  %v107_v39 = vpack.c.bf16 %v95_v35, %v93_v34  ;;  %v97_v41 = vld [vmem:[#allocation2 + $0x40] sm:$0xff]  ;;  %v99_v42 = vld [vmem:[#allocation2 + $0x50] sm:$0xff] }
  0x6a   :  { %472 = vmatpush1.bf16.msra.mxu1 %v740_v24  ;;  %v110_v40 = vpack.c.bf16 %v100_v37, %v98_v36  ;;  %v102_v43 = vld [vmem:[#allocation2 + $0x68] sm:$0xff]  ;;  %v104_v44 = vld [vmem:[#allocation2 + $0x78] sm:$0xff]  ;;  %v109_v45 = vpack.c.bf16 %v99_v42, %v97_v41  ;;  %v101_v47 = vld [vmem:[#allocation2 + $0x60] sm:$0xff] }
  0x6b   :  { %672 = vmatpush3.bf16.msra.mxu0 %v726_v7  ;;  %473 = vmatprep.subr.bf16.mxu1 %v741_v26  ;;  %v112_v46 = vpack.c.bf16 %v104_v44, %v102_v43  ;;  %v103_v48 = vld [vmem:[#allocation2 + $0x70] sm:$0xff]  ;;  %v755_v53 = vld [vmem:[#allocation8 + $0x60] ss:$8 sps:$4 sm:$0xff]   ;;  %v593_v58 = vld [vmem:[#allocation7] ss:$0 sm:$0xff] }
  0x6c   :  { %673 = vmatprep.subr.bf16.mxu0 %v727_v8  ;;  %v111_v49 = vpack.c.bf16 %v103_v48, %v101_v47  ;;  %v750_v50 = vld [vmem:[#allocation8 + $0x54] ss:$8 sps:$4 sm:$0xff]   ;;  %v752_v51 = vld [vmem:[#allocation8 + $0x50] ss:$8 sps:$4 sm:$0xff]   ;;  %v753_v52 = vld [vmem:[#allocation8 + $0x64] ss:$8 sps:$4 sm:$0xff]  }
  0x6d   :  { %v756_v54 = vld [vmem:[#allocation8 + $0x74] ss:$8 sps:$4 sm:$0xff]   ;;  %v758_v55 = vld [vmem:[#allocation8 + $0x70] ss:$8 sps:$4 sm:$0xff]  }
  0x6e   :  { %474 = vmatpush1.bf16.msra.mxu1 %v743_v28 }
  0x6f   :  { %674 = vmatpush3.bf16.msra.mxu0 %v728_v9  ;;  %475 = vmatprep.subr.bf16.mxu1 %v744_v30 }
  0x70   :  { %675 = vmatprep.subr.bf16.mxu0 %v729_v10 }
  0x72   :  { %476 = vmatpush1.bf16.msra.mxu1 %v746_v32 }
  0x73   :  { %676 = vmatpush3.bf16.msra.mxu0 %v730_v14  ;;  %477 = vmatprep.subr.bf16.mxu1 %v747_v33 }
  0x74   :  { %677 = vmatprep.subr.bf16.mxu0 %v731_v15 }
  0x76   :  { %478 = vmatpush1.bf16.msra.mxu1 %v749_v38 }
  0x77   :  { %678 = vmatpush3.bf16.msra.mxu0 %v732_v18  ;;  %479 = vmatprep.subr.bf16.mxu1 %v750_v50 }
  0x78   :  { %679 = vmatprep.subr.bf16.mxu0 %v733_v20 }
  0x7a   :  { %480 = vmatpush1.bf16.msra.mxu1 %v752_v51 }
  0x7b   :  { %680 = vmatpush3.bf16.msra.mxu0 %v734_v21  ;;  %481 = vmatprep.subr.bf16.mxu1 %v753_v52 }
  0x7e   :  { %281 = vmatmul.mubr.bf16.vlgmr.msra.gmra.mrb[0].mxu0 %v105_v29  ;;  %482 = vmatpush1.bf16.msra.mxu1 %v755_v53 }
  0x7f   :  { %288 = vmatprep.mubr.bf16.mxu0 %v108_v31  ;;  %483 = vmatprep.subr.bf16.mxu1 %v756_v54 }
  0x82   :  { %484 = vmatpush1.bf16.msra.mxu1 %v758_v55 }
  0x86   :  { %289 = vmatmul.mubr.bf16.gmra.mrb[4].mxu0 %v107_v39 }
  0x87   :  { %296 = vmatprep.mubr.bf16.mxu0 %v110_v40 }
  0x8e   :  { %297 = vmatmul.mubr.bf16.gmra.mrb[8].mxu0 %v109_v45 }
  0x8f   :  { %304 = vmatprep.mubr.bf16.mxu0 %v112_v46 }
  0x96   :  { %305 = vmatmul.mubr.bf16.gmra.mrb[12].mxu0 %v111_v49 }
 0x151   :  { %v681_v57 = vpop.f32.mrb[0].mxu0 }
 0x152   :  { %v682_v59 = vpop.f32.mrb[1].mxu0 }
 0x153   :  { %v683_v60 = vadd.f32 %v682_v59, %v681_v57  ;;  %v684_v61 = vpop.f32.mrb[2].mxu0 }
 0x154   :  { %v685_v62 = vpop.f32.mrb[3].mxu0 }
 0x155   :  { %v283_v63 = vadd.f32 %v683_v60, %v593_v58  ;;  %v686_v0 = vadd.f32 %v685_v62, %v684_v61 }
 0x157   :  { %v286_v1 = vadd.f32 %v686_v0, %v593_v58  ;;  %v313_v2 = vmax.f32 %v283_v63, 0.0 }
 0x159   :  { %v314_v3 = vmax.f32 %v286_v1, 0.0  ;;  %v687_v4 = vpop.f32.mrb[4].mxu0 }
 0x15a   :  { %v688_v5 = vpop.f32.mrb[5].mxu0 }
 0x15b   :  { %v689_v6 = vadd.f32 %v688_v5, %v687_v4  ;;  %v690_v7 = vpop.f32.mrb[6].mxu0  ;;  %v321_v8 = vpack.c.bf16 %v314_v3, %v313_v2 }
 0x15c   :  { %v691_v9 = vpop.f32.mrb[7].mxu0 }
 0x15d   :  { %v291_v10 = vadd.f32 %v689_v6, %v593_v58  ;;  %v692_v11 = vadd.f32 %v691_v9, %v690_v7  ;;  %646 = vst [vmem:[#allocation12] sm:$0xff] %v321_v8   ;;  %502 = vmatmul.mubr.bf16.vlgmr.msra.gmra.mrb[0].mxu1 %v321_v8 }
 0x15e   :  { %511 = vmatprep.mubr.bf16.mxu1 %v934_v56 }
 0x15f   :  { %v294_v12 = vadd.f32 %v692_v11, %v593_v58  ;;  %v315_v13 = vmax.f32 %v291_v10, 0.0 }
 0x161   :  { %v316_v14 = vmax.f32 %v294_v12, 0.0  ;;  %v693_v15 = vpop.f32.mrb[8].mxu0 }
 0x162   :  { %v694_v16 = vpop.f32.mrb[9].mxu0 }
 0x163   :  { %v695_v17 = vadd.f32 %v694_v16, %v693_v15  ;;  %v696_v18 = vpop.f32.mrb[10].mxu0  ;;  %v322_v19 = vpack.c.bf16 %v316_v14, %v315_v13 }
 0x164   :  { %v697_v20 = vpop.f32.mrb[11].mxu0 }
 0x165   :  { %v299_v21 = vadd.f32 %v695_v17, %v593_v58  ;;  %v698_v22 = vadd.f32 %v697_v20, %v696_v18  ;;  %662 = vst [vmem:[#allocation12 + $0x8] sm:$0xff] %v322_v19   ;;  %512 = vmatmul.mubr.bf16.gmra.mrb[4].mxu1 %v322_v19 }
 0x166   :  { %521 = vmatprep.mubr.bf16.mxu1 %v934_v56 }
 0x167   :  { %v302_v23 = vadd.f32 %v698_v22, %v593_v58  ;;  %v317_v24 = vmax.f32 %v299_v21, 0.0 }
 0x169   :  { %v318_v25 = vmax.f32 %v302_v23, 0.0  ;;  %v699_v26 = vpop.f32.mrb[12].mxu0 }
 0x16a   :  { %v700_v27 = vpop.f32.mrb[13].mxu0 }
 0x16b   :  { %v701_v28 = vadd.f32 %v700_v27, %v699_v26  ;;  %v702_v29 = vpop.f32.mrb[14].mxu0  ;;  %v323_v30 = vpack.c.bf16 %v318_v25, %v317_v24 }
 0x16c   :  { %v703_v31 = vpop.f32.mrb[15].mxu0 }
 0x16d   :  { %v307_v32 = vadd.f32 %v701_v28, %v593_v58  ;;  %v704_v33 = vadd.f32 %v703_v31, %v702_v29  ;;  %663 = vst [vmem:[#allocation12 + $0x10] sm:$0xff] %v323_v30   ;;  %522 = vmatmul.mubr.bf16.gmra.mrb[8].mxu1 %v323_v30 }
 0x16e   :  { %531 = vmatprep.mubr.bf16.mxu1 %v934_v56 }
 0x16f   :  { %v310_v34 = vadd.f32 %v704_v33, %v593_v58  ;;  %v319_v35 = vmax.f32 %v307_v32, 0.0 }
 0x171   :  { %v320_v36 = vmax.f32 %v310_v34, 0.0 }
 0x173   :  { %v324_v37 = vpack.c.bf16 %v320_v36, %v319_v35 }
 0x175   :  { %664 = vst [vmem:[#allocation12 + $0x18] sm:$0xff] %v324_v37   ;;  %532 = vmatmul.mubr.bf16.gmra.mrb[12].mxu1 %v324_v37 }
 0x176   :  { %880 = shalt.err (!%p877_p2)
}
 0x177   :  { %s881_s20 = scalar_lea.hbm %s1074_s6, 512 }
 0x178   :  { %p882_p3 = scmp.ne.s32.totalorder %s1074_s6, %s881_s20  ;;  %p885_p4 = scmp.lt.u32.totalorder %s881_s20, %s1074_s6 }
 0x17a   :  { %p887_p5 = pnand %p885_p4, %p882_p3 }
 0x17c   :  { %890 = shalt.err (!%p887_p5)
}
 0x17d   :  { %581 = dma.vmem_to_hbm [thread:$0]  %s576_s16, 512, %s1074_s6, [#allocation13], %s924_s7, %s924_s7, %s925_s8   ;;  %v379_v38 = vlaneseq  ;;  %v377_v41 = vld [vmem:[#allocation10] sm:$0x3] }
 0x17e   :  { %s936_s6 = smov [#allocation11]  }
 0x17f   :  { %v380_v39 = vshrl.u32 %v379_v38, 7  ;;  %s563_s7 = sshll.u32 %s936_s6, 4  ;;  %s564_s7 = int_to_ptr.vmem [resolvable:$true] %s563_s7 }
 0x180   :  { %s891_s8 = scalar_lea.vmem %s564_s7, 2048  ;;  %p896_p7 = scmp.lt.s32.totalorder %s564_s7, %s564_s7 }
 0x181   :  { %v381_v40 = vsub.s32 0, %v380_v39  ;;  %v385_v42 = vsub.s32 1, %v380_v39  ;;  %p892_p6 = scmp.ne.s32.totalorder %s564_s7, %s891_s8  ;;  %p897_p8 = scmp.lt.s32.totalorder %s891_s8, %s891_s8 }
 0x183   :  { %v382_v43 = vrot.slane %v377_v41, %v381_v40  ;;  %v386_v44 = vrot.slane %v377_v41, %v385_v42  ;;  %p898_p9 = por %p897_p8, %p896_p7 }
 0x185   :  { %p899_p10 = pnand %p898_p9, %p892_p6 }
 0x230   :  { %v503_v45 = vpop.f32.mrb[0].mxu1 }
 0x231   :  { %v504_v46 = vadd.f32 %v503_v45, %v382_v43  ;;  %v505_v47 = vpop.f32.mrb[1].mxu1 }
 0x232   :  { %v506_v48 = vadd.f32 %v505_v47, %v386_v44  ;;  %v507_v49 = vpop.f32.mrb[2].mxu1 }
 0x233   :  { %542 = vst [vmem:[#allocation11] sm:$0xff] %v504_v46  ;;  %v508_v50 = vadd.f32 %v507_v49, %v382_v43  ;;  %v509_v51 = vpop.f32.mrb[3].mxu1 }
 0x234   :  { %543 = vst [vmem:[#allocation11 + $0x8] sm:$0xff] %v506_v48  ;;  %v510_v52 = vadd.f32 %v509_v51, %v386_v44 }
 0x235   :  { %544 = vst [vmem:[#allocation11 + $0x10] sm:$0xff] %v508_v50 }
 0x236   :  { %545 = vst [vmem:[#allocation11 + $0x18] sm:$0xff] %v510_v52 }
 0x238   :  { %v513_v53 = vpop.f32.mrb[4].mxu1 }
 0x239   :  { %v514_v54 = vadd.f32 %v513_v53, %v382_v43  ;;  %v515_v55 = vpop.f32.mrb[5].mxu1 }
 0x23a   :  { %v516_v56 = vadd.f32 %v515_v55, %v386_v44  ;;  %v517_v57 = vpop.f32.mrb[6].mxu1 }
 0x23b   :  { %546 = vst [vmem:[#allocation11 + $0x20] sm:$0xff] %v514_v54  ;;  %v518_v58 = vadd.f32 %v517_v57, %v382_v43  ;;  %v519_v59 = vpop.f32.mrb[7].mxu1 }
 0x23c   :  { %547 = vst [vmem:[#allocation11 + $0x28] sm:$0xff] %v516_v56  ;;  %v520_v60 = vadd.f32 %v519_v59, %v386_v44 }
 0x23d   :  { %548 = vst [vmem:[#allocation11 + $0x30] sm:$0xff] %v518_v58 }
 0x23e   :  { %549 = vst [vmem:[#allocation11 + $0x38] sm:$0xff] %v520_v60 }
 0x240   :  { %v523_v61 = vpop.f32.mrb[8].mxu1 }
 0x241   :  { %v524_v62 = vadd.f32 %v523_v61, %v382_v43  ;;  %v525_v63 = vpop.f32.mrb[9].mxu1 }
 0x242   :  { %v526_v0 = vadd.f32 %v525_v63, %v386_v44  ;;  %v527_v1 = vpop.f32.mrb[10].mxu1 }
 0x243   :  { %550 = vst [vmem:[#allocation11 + $0x40] sm:$0xff] %v524_v62  ;;  %v528_v2 = vadd.f32 %v527_v1, %v382_v43  ;;  %v529_v3 = vpop.f32.mrb[11].mxu1 }
 0x244   :  { %551 = vst [vmem:[#allocation11 + $0x48] sm:$0xff] %v526_v0  ;;  %v530_v4 = vadd.f32 %v529_v3, %v386_v44 }
 0x245   :  { %552 = vst [vmem:[#allocation11 + $0x50] sm:$0xff] %v528_v2 }
 0x246   :  { %553 = vst [vmem:[#allocation11 + $0x58] sm:$0xff] %v530_v4 }
 0x248   :  { %v533_v5 = vpop.f32.mrb[12].mxu1 }
 0x249   :  { %v534_v6 = vadd.f32 %v533_v5, %v382_v43  ;;  %v535_v7 = vpop.f32.mrb[13].mxu1 }
 0x24a   :  { %v536_v8 = vadd.f32 %v535_v7, %v386_v44  ;;  %v537_v9 = vpop.f32.mrb[14].mxu1 }
 0x24b   :  { %554 = vst [vmem:[#allocation11 + $0x60] sm:$0xff] %v534_v6  ;;  %v538_v10 = vadd.f32 %v537_v9, %v382_v43  ;;  %v539_v11 = vpop.f32.mrb[15].mxu1 }
 0x24c   :  { %555 = vst [vmem:[#allocation11 + $0x68] sm:$0xff] %v536_v8  ;;  %v540_v12 = vadd.f32 %v539_v11, %v386_v44 }
 0x24d   :  { %556 = vst [vmem:[#allocation11 + $0x70] sm:$0xff] %v538_v10 }
 0x24e   :  { %557 = vst [vmem:[#allocation11 + $0x78] sm:$0xff] %v540_v12 }
 0x24f   :  { %902 = shalt.err (!%p899_p10)
}
 0x250   :  { %s903_s27 = scalar_lea.hbm %s1073_s5, 2048 }
 0x251   :  { %p904_p11 = scmp.ne.s32.totalorder %s1073_s5, %s903_s27  ;;  %p907_p12 = scmp.lt.u32.totalorder %s903_s27, %s1073_s5 }
 0x253   :  { %p909_p13 = pnand %p907_p12, %p904_p11 }
 0x255   :  { %912 = shalt.err (!%p909_p13)
}
 0x256   :  { %569 = dma.vmem_to_hbm [thread:$0]  %s564_s7, 2048, %s1073_s5, [#allocation4], %s930_s3, %s930_s3, %s931_s12  }
 0x257   :  { %919 = dma.done.wait [#allocation4], 2048  }
 0x258   :  { %920 = vsyncadd [#allocation4], 4294965248 }
 0x259   :  { %921 = dma.done.wait [#allocation13], 512  }
 0x25a   :  { %922 = vsyncadd [#allocation13], 4294966784 }
 0x25b   :  { %588 = vsyncpa [#allocation3], 1 }
 0x25c   :  { %589 = vsyncpa [#allocation6], 1 }
 0x25d   :  { %590 = vsyncpa [#allocation9], 1 }
 0x25e   :  { %591 = vsyncpa [#allocation4], 1 }
 0x25f   :  { %592 = vsyncpa [#allocation13], 1 }

</bundles_post_ra>
